<compile_context>
chip_gen: v6e
topology: v6e:2x2x1
jax: 0.10.0
libtpu: 0.0.40
codegen_flags: <defaults>
</compile_context>

<pallas_src>
import math
from functools import lru_cache, partial

import jax
import jax.numpy as jnp
import numpy as np
from jax.experimental import pallas as pl
from jax.experimental.pallas import tpu as pltpu

_MIB = 1024 * 1024


# ---------------------------------------------------------------------------
# Generation-aware sizing (VMEM differs: v5e/v6e 128 MiB, v7x 64 MiB per TC).
# ---------------------------------------------------------------------------
@lru_cache(maxsize=None)
def _tpu_generation():
    try:
        kind = jax.devices()[0].device_kind.lower()
    except Exception:
        return None
    for token, gen in (("v7", 7), ("7x", 7), ("v6", 6), ("v5", 5), ("v4", 4)):
        if token in kind:
            return gen
    return None


@lru_cache(maxsize=None)
def _vmem_capacity_bytes():
    gen = _tpu_generation()
    if gen in (5, 6):
        return 128 * _MIB
    # v7x or unknown (CPU interpret / future chips): be conservative.
    return 64 * _MIB


def _vmem_limit_bytes():
    # 64 MiB scoped on 128 MiB parts; stay at 32 MiB on v7x (64 MiB physical).
    return 64 * _MIB if _vmem_capacity_bytes() >= 128 * _MIB else 32 * _MIB


def _default_block_rows():
    # At C=1024 f32: 2048 rows = 8 MiB block (~32 MiB double-buffered, v5e/v6e);
    # 1024 rows = 4 MiB block (~16 MiB double-buffered, fits v7x's 32 MiB scope).
    return 2048 if _vmem_capacity_bytes() >= 128 * _MIB else 1024


def _fused_budget_bytes():
    # Single-shot (unpipelined) residency budget for the fused pad kernel.
    return 16 * _MIB if _vmem_capacity_bytes() >= 128 * _MIB else 8 * _MIB


def _compute_dtype(dtype):
    # v6e/v7x have bf16 VPU/EUP -> keep bf16 compute; v5e does not -> upcast to f32.
    if jnp.dtype(dtype) == jnp.bfloat16 and (_tpu_generation() or 0) >= 6:
        return jnp.bfloat16
    return jnp.float32


def _sigmoid(x):
    """Exact sigmoid via 0.5 + 0.5*tanh(0.5*x): one EUP push, mul/add on idle VALU."""
    cd = _compute_dtype(x.dtype)
    xc = x.astype(cd)
    half = jnp.asarray(0.5, cd)
    return half + half * jnp.tanh(half * xc)


# ---------------------------------------------------------------------------
# Kernel 1: fused sigmoid + constant pad (zero_pad > 0, out_features == 1).
#   input : weight viewed as a lane-dense (ow, ow) pixel grid
#   output: padded (ow + 2p, ow + 2p) grid written directly (no XLA pad/transpose)
# ---------------------------------------------------------------------------
def _fused_pad_sigmoid_kernel(w_ref, o_ref, *, p, ow, pad_val):
    hp = ow + 2 * p
    fill = jnp.asarray(pad_val, o_ref.dtype)
    # Border-only fill: the interior is stored exactly once (below), not twice.
    o_ref[pl.ds(0, p), :] = jnp.full((p, hp), fill, o_ref.dtype)              # top
    o_ref[pl.ds(p + ow, p), :] = jnp.full((p, hp), fill, o_ref.dtype)         # bottom
    o_ref[pl.ds(p, ow), pl.ds(0, p)] = jnp.full((ow, p), fill, o_ref.dtype)   # left
    o_ref[pl.ds(p, ow), pl.ds(p + ow, p)] = jnp.full((ow, p), fill, o_ref.dtype)  # right
    # Interior: single store at the (static) pad offset.
    # TODO(synk): for large ow, shifting by p with pltpu.roll + iota masks and doing
    # one aligned full-tile store would remove the masked-store tax of the +p offset.
    o_ref[pl.ds(p, ow), pl.ds(p, ow)] = _sigmoid(w_ref[...]).astype(o_ref.dtype)


def fused_pad_sigmoid(w_grid, zero_pad, pad_val):
    ow = int(w_grid.shape[0])
    hp = ow + 2 * int(zero_pad)
    kernel = partial(_fused_pad_sigmoid_kernel, p=int(zero_pad), ow=ow,
                     pad_val=float(pad_val))
    return pl.pallas_call(
        kernel,
        out_shape=jax.ShapeDtypeStruct((hp, hp), w_grid.dtype),
        in_specs=[pl.BlockSpec(memory_space=pltpu.MemorySpace.VMEM)],
        out_specs=pl.BlockSpec(memory_space=pltpu.MemorySpace.VMEM),
        compiler_params=pltpu.CompilerParams(vmem_limit_bytes=_vmem_limit_bytes()),
    )(w_grid)


# ---------------------------------------------------------------------------
# Kernel 2: row-tiled elementwise sigmoid on a lane-dense (R, C) slab.
# ---------------------------------------------------------------------------
def _sigmoid_slab_kernel(w_ref, o_ref):
    o_ref[...] = _sigmoid(w_ref[...]).astype(o_ref.dtype)


def pixel_lookup_sigmoid(weight, block_rows=None):
    """Elementwise sigmoid(weight) computed on a lane-dense 2-D slab view."""
    orig_shape = weight.shape
    n = int(np.prod(orig_shape))
    # Lane-dense slab: C a multiple of 128 so vregs stay fully packed even when n
    # is not; pad the tail (< C elements) and slice it off afterwards.
    c = 1024 if n >= 1024 else 128
    n_pad = -(-n // c) * c
    flat = weight.reshape(-1)
    if n_pad != n:
        flat = jnp.concatenate([flat, jnp.zeros((n_pad - n,), dtype=weight.dtype)])
    r = n_pad // c
    w2d = flat.reshape(r, c)

    if block_rows is None:
        block_rows = _default_block_rows()
    block_rows = min(int(block_rows), r)
    if block_rows != r and block_rows % 8 != 0:
        block_rows = max(8, (block_rows // 8) * 8)   # respect (8, 128) tiling constraint

    grid = (pl.cdiv(r, block_rows),)
    out2d = pl.pallas_call(
        _sigmoid_slab_kernel,
        out_shape=jax.ShapeDtypeStruct((r, c), weight.dtype),
        grid_spec=pltpu.PrefetchScalarGridSpec(
            num_scalar_prefetch=0,
            grid=grid,
            in_specs=[pl.BlockSpec((block_rows, c), lambda i: (i, 0))],
            out_specs=pl.BlockSpec((block_rows, c), lambda i: (i, 0)),
        ),
        # TODO(synk): on v7x, pltpu.CORE_PARALLEL on this axis (or pl.core_map) would
        # split this mem-bound stream across both TensorCores; left as "parallel"
        # until validated on hardware.
        compiler_params=pltpu.CompilerParams(
            dimension_semantics=("parallel",),
            vmem_limit_bytes=_vmem_limit_bytes(),
        ),
    )(w2d)
    out_flat = out2d.reshape(-1)
    if n_pad != n:
        out_flat = out_flat[:n]
    return out_flat.reshape(orig_shape)


# ---------------------------------------------------------------------------
# Kernel 3: sigmoid with the transpose fused in-kernel (out_features > 1 path).
#   input : (out_features, tn) tile of W;  output: (tn, out_features) tile of W.T
# ---------------------------------------------------------------------------
def _sigmoid_transpose_kernel(w_ref, o_ref):
    o_ref[...] = jnp.transpose(_sigmoid(w_ref[...]).astype(o_ref.dtype))


def pixel_lookup_sigmoid_transposed(weight, block_cols=512):
    out_features, in_features = weight.shape
    tn = min(int(block_cols), in_features)
    if tn != in_features and tn % 128 != 0:
        tn = max(128, (tn // 128) * 128)
    grid = (pl.cdiv(in_features, tn),)
    return pl.pallas_call(
        _sigmoid_transpose_kernel,
        out_shape=jax.ShapeDtypeStruct((in_features, out_features), weight.dtype),
        grid_spec=pltpu.PrefetchScalarGridSpec(
            num_scalar_prefetch=0,
            grid=grid,
            in_specs=[pl.BlockSpec((out_features, tn), lambda i: (0, i))],
            out_specs=pl.BlockSpec((tn, out_features), lambda i: (i, 0)),
        ),
        compiler_params=pltpu.CompilerParams(
            dimension_semantics=("parallel",),
            vmem_limit_bytes=_vmem_limit_bytes(),
        ),
    )(weight)


# ---------------------------------------------------------------------------
# Forward pass.
# ---------------------------------------------------------------------------
def grid_of_pixels_forward(inputs, weight, zero_pad=0, pad_val=0.0,
                           use_xla_small_path=False):
    """JAX/Pallas equivalent of GridOfPixels.forward.

    inputs: dict with 'coords' (passed through unchanged; the net ignores it).
    weight: (out_features, in_features) PixelLookup weight (PyTorch Linear layout).
    """
    coords = inputs["coords"]
    out_features, in_features = weight.shape

    # Tiny grids are dispatch-latency bound (~ns of work vs ~0.35 us/step Pallas
    # overhead); optionally let XLA emit one fused op instead.  Off by default so
    # the Pallas kernels are exercised.
    if use_xla_small_path and in_features * out_features <= 64 * 1024:
        sig = jax.nn.sigmoid(weight.astype(jnp.float32)).astype(weight.dtype)
        if zero_pad > 0:
            assert out_features == 1, "zero_pad path requires out_features == 1"
            ow = math.isqrt(in_features)
            assert ow * ow == in_features, "in_features must be a perfect square"
            padded = jnp.pad(sig.reshape(ow, ow),
                             ((zero_pad, zero_pad), (zero_pad, zero_pad)),
                             constant_values=pad_val)
            output = padded.reshape(1, -1, 1)
        else:
            output = jnp.transpose(sig)[None, :, :]
        return {"model_in": coords, "model_out": output}

    if zero_pad > 0:
        # PyTorch's reshape((ow, ow)) silently assumes out_features == 1.
        assert out_features == 1, "zero_pad path requires out_features == 1"
        ow = math.isqrt(in_features)
        assert ow * ow == in_features, "in_features must be a perfect square"
        p = int(zero_pad)
        hp = ow + 2 * p

        itemsize = jnp.dtype(weight.dtype).itemsize
        # input + f32 intermediate + padded output (single-shot residency).
        req_bytes = ow * ow * (itemsize + 4) + hp * hp * itemsize
        if req_bytes <= _fused_budget_bytes():
            # Fused path: sigmoid + pad in a single kernel, no extra HBM round-trip.
            padded = fused_pad_sigmoid(weight.reshape(ow, ow), p, pad_val)
        else:
            # TODO(synk): a row-gridded fused pad kernel would pipeline and avoid this
            # extra HBM round-trip through XLA pad for very large grids.
            sig = pixel_lookup_sigmoid(weight).reshape(ow, ow)
            padded = jnp.pad(sig, ((p, p), (p, p)), constant_values=pad_val)
        output = padded.reshape(1, -1, 1)
    else:
        if out_features == 1:
            # (1, N) -> (1, N, 1): transpose is metadata-only; compute stays lane-dense.
            output = pixel_lookup_sigmoid(weight).reshape(1, in_features, 1)
        else:
            # sigmoid(W.T)[None]: transpose fused into the kernel (XLU slot), avoiding
            # a separate HBM read+write pass in the wrapper.
            output = pixel_lookup_sigmoid_transposed(weight)[None, :, :]

    # torch's coords.clone().detach() is a no-op here (JAX arrays are immutable).
    return {"model_in": coords, "model_out": output}


if __name__ == "__main__":
    key = jax.random.PRNGKey(0)

    # ---- Case 1: canonical GridOfPixels config (16x16 pixel grid, zero_pad=1) ----
    in_features, out_features = 256, 1        # 16 * 16
    zero_pad, pad_val = 1, 0.0
    coords = jax.random.uniform(key, (1, in_features, 2), dtype=jnp.float32,
                                minval=-1.0, maxval=1.0)
    # init_weights_gop: uniform(-1.0, -1.0) == constant -1.0.
    weight = jnp.full((out_features, in_features), -1.0, dtype=jnp.float32)

    fwd = jax.jit(partial(grid_of_pixels_forward, zero_pad=zero_pad, pad_val=pad_val))
    out = fwd({"coords": coords}, weight)
    model_out = np.asarray(jax.block_until_ready(out["model_out"]))

    sig_np = 1.0 / (1.0 + np.exp(-np.asarray(weight).T))            # (256, 1)
    ow = math.isqrt(in_features)
    ref_grid = np.pad(sig_np.reshape(ow, ow),
                      ((zero_pad, zero_pad), (zero_pad, zero_pad)),
                      constant_values=pad_val)
    ref_out = ref_grid.reshape(1, -1, 1)
    assert model_out.shape == ref_out.shape, (model_out.shape, ref_out.shape)
    np.testing.assert_allclose(model_out, ref_out, rtol=1e-3, atol=1e-3)
    np.testing.assert_allclose(np.asarray(out["model_in"]), np.asarray(coords))

    # Same config through the tiny-grid XLA fast path (dispatch-latency escape hatch).
    out_fast = grid_of_pixels_forward({"coords": coords}, weight, zero_pad=zero_pad,
                                      pad_val=pad_val, use_xla_small_path=True)
    np.testing.assert_allclose(
        np.asarray(jax.block_until_ready(out_fast["model_out"])), ref_out,
        rtol=1e-3, atol=1e-3)

    # ---- Case 2: gridded lane-dense sigmoid slab kernel (zero_pad == 0) ----
    n2 = 32 * 1024                                               # slab view (32, 1024)
    w2 = jax.random.uniform(jax.random.PRNGKey(1), (1, n2), dtype=jnp.float32,
                            minval=-3.0, maxval=3.0)
    sig2 = np.asarray(jax.block_until_ready(pixel_lookup_sigmoid(w2, block_rows=8)))
    np.testing.assert_allclose(sig2, 1.0 / (1.0 + np.exp(-np.asarray(w2))),
                               rtol=1e-3, atol=1e-3)

    out2 = grid_of_pixels_forward({"coords": coords}, w2, zero_pad=0)
    mo2 = np.asarray(jax.block_until_ready(out2["model_out"]))
    assert mo2.shape == (1, n2, 1), mo2.shape
    np.testing.assert_allclose(mo2[0, :, 0], sig2[0], rtol=1e-3, atol=1e-3)

    # ---- Case 3: out_features > 1, zero_pad == 0 -> transpose fused in-kernel ----
    w3 = jax.random.uniform(jax.random.PRNGKey(2), (8, 1024), dtype=jnp.float32,
                            minval=-3.0, maxval=3.0)
    coords3 = jax.random.uniform(jax.random.PRNGKey(3), (1, 1024, 2), dtype=jnp.float32)
    out3 = grid_of_pixels_forward({"coords": coords3}, w3, zero_pad=0)
    mo3 = np.asarray(jax.block_until_ready(out3["model_out"]))
    ref3 = (1.0 / (1.0 + np.exp(-np.asarray(w3).T)))[None, :, :]
    assert mo3.shape == ref3.shape, (mo3.shape, ref3.shape)
    np.testing.assert_allclose(mo3, ref3, rtol=1e-3, atol=1e-3)

    # ---- Case 4: element count not a multiple of 128 -> padded lane-dense slab ----
    w4 = jax.random.uniform(jax.random.PRNGKey(4), (3, 100), dtype=jnp.float32,
                            minval=-3.0, maxval=3.0)
    sig4 = np.asarray(jax.block_until_ready(pixel_lookup_sigmoid(w4)))
    np.testing.assert_allclose(sig4, 1.0 / (1.0 + np.exp(-np.asarray(w4))),
                               rtol=1e-3, atol=1e-3)

    print("KERNEL_OK")
</pallas_src>

<mosaic_0001>
module attributes {stable_mosaic.version = 11 : i64} {
  func.func @_fused_pad_sigmoid_kernel(%arg0: memref<16x16xf32, #tpu.memory_space<vmem>>, %arg1: memref<18x18xf32, #tpu.memory_space<vmem>>) attributes {dimension_semantics = [], scalar_prefetch = 0 : i64, scratch_operands = 0 : i64, tpu.core_type = #tpu.core_type<tc>} {
    %cst = arith.constant 0.000000e+00 : f32
    %0 = vector.broadcast %cst : f32 to vector<1x18xf32>
    %c0 = arith.constant 0 : index
    %c0_0 = arith.constant 0 : index
    %1 = vector.load %arg1[%c0, %c0_0] : memref<18x18xf32, #tpu.memory_space<vmem>>, vector<1x18xf32>
    tpu.vector_store %arg1[%c0, %c0_0], %0 {strides = array<i32>} : memref<18x18xf32, #tpu.memory_space<vmem>>, vector<1x18xf32>,
    %cst_1 = arith.constant 0.000000e+00 : f32
    %2 = vector.broadcast %cst_1 : f32 to vector<1x18xf32>
    %c17 = arith.constant 17 : index
    %c0_2 = arith.constant 0 : index
    %3 = vector.load %arg1[%c17, %c0_2] : memref<18x18xf32, #tpu.memory_space<vmem>>, vector<1x18xf32>
    tpu.vector_store %arg1[%c17, %c0_2], %2 {strides = array<i32>} : memref<18x18xf32, #tpu.memory_space<vmem>>, vector<1x18xf32>,
    %cst_3 = arith.constant 0.000000e+00 : f32
    %4 = vector.broadcast %cst_3 : f32 to vector<16x1xf32>
    %c1 = arith.constant 1 : index
    %c0_4 = arith.constant 0 : index
    %5 = vector.load %arg1[%c1, %c0_4] : memref<18x18xf32, #tpu.memory_space<vmem>>, vector<16x1xf32>
    tpu.vector_store %arg1[%c1, %c0_4], %4 {strides = array<i32>} : memref<18x18xf32, #tpu.memory_space<vmem>>, vector<16x1xf32>,
    %cst_5 = arith.constant 0.000000e+00 : f32
    %6 = vector.broadcast %cst_5 : f32 to vector<16x1xf32>
    %c1_6 = arith.constant 1 : index
    %c17_7 = arith.constant 17 : index
    %7 = vector.load %arg1[%c1_6, %c17_7] : memref<18x18xf32, #tpu.memory_space<vmem>>, vector<16x1xf32>
    tpu.vector_store %arg1[%c1_6, %c17_7], %6 {strides = array<i32>} : memref<18x18xf32, #tpu.memory_space<vmem>>, vector<16x1xf32>,
    %c0_8 = arith.constant 0 : index
    %c0_9 = arith.constant 0 : index
    %8 = vector.load %arg0[%c0_8, %c0_9] : memref<16x16xf32, #tpu.memory_space<vmem>>, vector<16x16xf32>
    %cst_10 = arith.constant 5.000000e-01 : f32
    %9 = vector.broadcast %cst_10 : f32 to vector<16x16xf32>
    %10 = arith.mulf %9, %8 : vector<16x16xf32>
    %11 = math.tanh %10 : vector<16x16xf32>
    %cst_11 = arith.constant 5.000000e-01 : f32
    %12 = vector.broadcast %cst_11 : f32 to vector<16x16xf32>
    %13 = arith.mulf %12, %11 : vector<16x16xf32>
    %cst_12 = arith.constant 5.000000e-01 : f32
    %14 = vector.broadcast %cst_12 : f32 to vector<16x16xf32>
    %15 = arith.addf %14, %13 : vector<16x16xf32>
    %c1_13 = arith.constant 1 : index
    %c1_14 = arith.constant 1 : index
    %16 = vector.load %arg1[%c1_13, %c1_14] : memref<18x18xf32, #tpu.memory_space<vmem>>, vector<16x16xf32>
    tpu.vector_store %arg1[%c1_13, %c1_14], %15 {strides = array<i32>} : memref<18x18xf32, #tpu.memory_space<vmem>>, vector<16x16xf32>,
    return
  }
}

</mosaic_0001>

<bundles_post_ra>
// kernel: grid_of_pixels_forward.1
= control target key start
LH: loop header
LB: loop body
LE: loop exit
PB: predicated region body
PF: predicated region fallthrough
CT: control target
= control target key end

     0   :  { %vm8_vm0 = vcmask 139264   ;;  %vm11_vm1 = vcmask 7168   ;;  %vm14_vm2 = vcmask 146568   ;;  %v48_v2 = vmov 0.0   ;;  %s49_s21 = smov 1   ;;  %s90_s0 = inlined_call_operand.vmem [shape: f32[16,16], index: 0, kind: input, shape index: {}]   ;;  %s91_s1 = inlined_call_operand.vmem [shape: f32[18,18], index: 1, kind: output, shape index: {}]  }
   0x1   :  { %v17_v0 = vld [vmem:[%s90_s0] sm:$0xff]  ;;  %v18_v1 = vld [vmem:[%s90_s0 + $0x8] sm:$0xff]  ;;  %9 = vst.msk [vmem:[%s91_s1] sm:$0x1] %vm8_vm0, %v48_v2  ;;  %10 = vst.msk [vmem:[%s91_s1 + $0x11] sm:$0x1] %vm8_vm0, %v48_v2 }
   0x2   :  { %12 = vst.msk [vmem:[%s91_s1 + $0x1] sm:$0xff] %vm11_vm1, %v48_v2  ;;  %13 = vst.msk [vmem:[%s91_s1 + $0x9] sm:$0xff] %vm11_vm1, %v48_v2  ;;  %v19_v3 = vmul.f32 0.5, %v17_v0  ;;  %v20_v4 = vmul.f32 0.5, %v18_v1  ;;  %vm35_vm3 = vcmask 138248  }
   0x3   :  { %15 = vst.msk [vmem:[%s91_s1 + $0x1] sm:$0xff] %vm14_vm2, %v48_v2  ;;  %16 = vst.msk [vmem:[%s91_s1 + $0x9] sm:$0xff] %vm14_vm2, %v48_v2 }
   0x4   :  { %44 = vtanh.f32 %v19_v3 }
   0x5   :  { %46 = vtanh.f32 %v20_v4 }
  0x11   :  { %v45_v5 = vpop.eup %44 }
  0x12   :  { %v47_v6 = vpop.eup %46  ;;  %v23_v7 = vmul.f32 0.5, %v45_v5 }
  0x13   :  { %v24_v8 = vmul.f32 0.5, %v47_v6 }
  0x14   :  { %v25_v9 = vadd.f32 0.5, %v23_v7 }
  0x15   :  { %v26_v10 = vadd.f32 0.5, %v24_v8 }
  0x16   :  { %29 = vrot.lane.b32.xlu0 %v25_v9, %s49_s21 }
  0x1a   :  { %31 = vrot.lane.b32.xlu0 %v26_v10, %s49_s21 }
  0x88   :  { %v30_v11 = vpop.permute.xlu0 %29 }
  0x89   :  { %36 = vst.msk [vmem:[%s91_s1 + $0x1] sm:$0xff] %vm35_vm3, %v30_v11 }
  0x8c   :  { %v32_v12 = vpop.permute.xlu0 %31 }
  0x8d   :  { %37 = vst.msk [vmem:[%s91_s1 + $0x9] sm:$0xff] %vm35_vm3, %v32_v12 }

</bundles_post_ra>
